<compile_context>
chip_gen: v5e
topology: v5e:2x2
jax: 0.10.0
libtpu: 0.0.40
codegen_flags: <defaults>
</compile_context>

<pallas_src>
import functools
import math

import jax
import jax.numpy as jnp
from jax import lax
from jax.experimental import pallas as pl
from jax.experimental.pallas import tpu as pltpu


def _largest_divisor(n, candidates):
    for c in candidates:
        if c <= n and n % c == 0:
            return c
    return n


def _vmem_limit(nbytes):
    # ~40% headroom over the static estimate; floor 16 MiB, cap below the
    # smallest physical VMEM (v7x: 64 MiB).
    # TODO(synk): derive the cap per generation via pltpu.get_tpu_info().
    return int(min(max(nbytes * 1.4, 16 * 2**20), 60 * 2**20))


# ----------------------------------------------------------------------------
# Kernel 1: flash-style GQA attention.
# grid = (B, kv-head-groups, KV tiles); output written directly in
# [B, S, NH*HD] layout (per-group column slice), no HBM transpose afterwards.
# ----------------------------------------------------------------------------
def _attn_kernel(q_ref, k_ref, v_ref, o_ref, m_sc, l_sc, acc_sc,
                 *, scale, group, gpb):
    # q_ref : [1, gpb*group, S, HD]     k_ref/v_ref : [1, gpb, TKV, HD]
    # o_ref : [1, S, gpb*group*HD]
    # m_sc/l_sc : [gpb, group*S, 1] f32 ; acc_sc : [gpb, group*S, HD] f32
    S, HD = q_ref.shape[2], q_ref.shape[3]
    GS = group * S
    kvt = pl.program_id(2)

    @pl.when(kvt == 0)
    def _():
        m_sc[...] = jnp.full_like(m_sc, -jnp.inf)
        l_sc[...] = jnp.zeros_like(l_sc)
        acc_sc[...] = jnp.zeros_like(acc_sc)

    for gg in range(gpb):  # unrolled; gpb == 1 at production (lane-dense) shapes
        # repeat_kv (repeat_interleave) semantics: query heads
        # [gg*group, (gg+1)*group) attend with kv head gg of this block.
        q = q_ref[0, gg * group:(gg + 1) * group]                 # [group, S, HD]
        qf = (q * scale).reshape(GS, HD)                          # scale on q: O(S*HD)
        k = k_ref[0, gg]                                          # [TKV, HD]
        v = v_ref[0, gg]
        # QK^T as a direct contraction over HD (no .T relayout of the K tile).
        s = lax.dot_general(qf, k, (((1,), (1,)), ((), ())),
                            preferred_element_type=jnp.float32)   # [GS, TKV]
        m_prev = m_sc[gg]
        m_new = jnp.maximum(m_prev, jnp.max(s, axis=-1, keepdims=True))
        alpha = jnp.exp(m_prev - m_new)
        # TODO(synk): compute p in bf16 on v6e/v7x (f32 exp can be EUP-bound);
        # kept f32 here so the same kernel also runs on v5e.
        p = jnp.exp(s - m_new)
        l_sc[gg] = alpha * l_sc[gg] + jnp.sum(p, axis=-1, keepdims=True)
        # deferred normalization: PV on un-normalized p; scale rows at the end.
        acc_sc[gg] = alpha * acc_sc[gg] + lax.dot_general(
            p.astype(v.dtype), v, (((1,), (0,)), ((), ())),
            preferred_element_type=jnp.float32)
        m_sc[gg] = m_new

    @pl.when(kvt == pl.num_programs(2) - 1)
    def _():
        for gg in range(gpb):
            o = acc_sc[gg] * pl.reciprocal(l_sc[gg], approx=True)  # [GS, HD]
            # head-interleave relayout [group,S,HD] -> [S, group*HD], done once
            # per (batch, kv-group) in the epilogue (not per KV tile).
            cols = jnp.concatenate(
                [o[h * S:(h + 1) * S] for h in range(group)], axis=-1)
            lo = gg * group * HD
            o_ref[0, :, lo:lo + group * HD] = cols.astype(o_ref.dtype)


def sdpa_gqa_fused_layout(q, ks, vs, group_size):
    B, NH, S, HD = q.shape
    NKV = ks.shape[1]
    assert NH == NKV * group_size
    hidden = NH * HD
    scale = 1.0 / math.sqrt(HD)

    # One kv-head group per grid step when its output column slice is
    # lane-dense (multiple of 128); otherwise keep all groups in one block so
    # the output block stays full-width (e.g. the toy HD=8 configuration).
    gpb = 1 if (group_size * HD) % 128 == 0 else NKV
    n_gq = NKV // gpb
    tkv = _largest_divisor(S, (512, 256, 128, 64, 32, 16, 8))
    n_kv = S // tkv

    kernel = functools.partial(_attn_kernel, scale=scale, group=group_size, gpb=gpb)

    isz = jnp.dtype(q.dtype).itemsize
    blk_bytes = isz * (gpb * group_size * S * HD          # q block
                       + 2 * gpb * tkv * HD               # k + v blocks
                       + S * gpb * group_size * HD)       # out block
    scratch_bytes = 4 * gpb * group_size * S * (HD + 2)
    cost = pl.CostEstimate(
        flops=4 * B * NH * S * S * HD,                    # QK^T + PV
        transcendentals=B * NH * S * S,                   # exp
        bytes_accessed=isz * (q.size + ks.size + vs.size + B * S * hidden),
    )

    # TODO(synk): for very long S also tile the query rows (extra "parallel"
    # axis) to bound the q block / f32 accumulator VMEM footprint.
    return pl.pallas_call(
        kernel,
        out_shape=jax.ShapeDtypeStruct((B, S, hidden), q.dtype),
        grid=(B, n_gq, n_kv),
        in_specs=[
            pl.BlockSpec((1, gpb * group_size, S, HD), lambda b, g, t: (b, g, 0, 0)),
            pl.BlockSpec((1, gpb, tkv, HD), lambda b, g, t: (b, g, t, 0)),
            pl.BlockSpec((1, gpb, tkv, HD), lambda b, g, t: (b, g, t, 0)),
        ],
        out_specs=pl.BlockSpec((1, S, gpb * group_size * HD),
                               lambda b, g, t: (b, 0, g)),
        scratch_shapes=[
            pltpu.VMEM((gpb, group_size * S, 1), jnp.float32),
            pltpu.VMEM((gpb, group_size * S, 1), jnp.float32),
            pltpu.VMEM((gpb, group_size * S, HD), jnp.float32),
        ],
        compiler_params=pltpu.CompilerParams(
            dimension_semantics=("parallel", "parallel", "arbitrary"),
            vmem_limit_bytes=_vmem_limit(2 * blk_bytes + scratch_bytes),
        ),
        cost_estimate=cost,
    )(q, ks, vs)


# ----------------------------------------------------------------------------
# Kernel 2: out_proj + residual + LayerNorm + gated-SiLU MLP + residual.
# grid = (row tiles, inter tiles).  out_proj / LN run once per row tile
# (j == 0); the MLP intermediate dimension is streamed tile-by-tile with an
# f32 down-projection accumulator.
# ----------------------------------------------------------------------------
def _bottom_kernel(attn_ref, res_ref,
                   wo_ref, bo_ref, g_ref, lb_ref,
                   wg_ref, bg_ref, wu_ref, bu_ref,
                   wd_ref, bd_ref,
                   out_ref,
                   hn_sc, res_sc, acc_sc, *, eps):
    j = pl.program_id(1)

    @pl.when(j == 0)
    def _():
        # out_proj (weight dtype drives MXU precision; f32 accumulation)
        x = jnp.dot(attn_ref[...].astype(wo_ref.dtype), wo_ref[...],
                    preferred_element_type=jnp.float32) + bo_ref[...]
        hidden = x + res_ref[...].astype(jnp.float32)
        res_sc[...] = hidden
        # LayerNorm (ln2) -- elementwise math in f32
        mu = jnp.mean(hidden, axis=-1, keepdims=True)
        var = jnp.mean((hidden - mu) ** 2, axis=-1, keepdims=True)
        hn = (hidden - mu) * lax.rsqrt(var + eps)
        hn_sc[...] = hn * g_ref[...] + lb_ref[...]
        acc_sc[...] = jnp.zeros_like(acc_sc)

    # one inter-tile of the gated-SiLU MLP; partial down-proj accumulated.
    hn = hn_sc[...]
    gate = jnp.dot(hn.astype(wg_ref.dtype), wg_ref[...],
                   preferred_element_type=jnp.float32) + bg_ref[...]
    up = jnp.dot(hn.astype(wu_ref.dtype), wu_ref[...],
                 preferred_element_type=jnp.float32) + bu_ref[...]
    act = gate * lax.logistic(gate) * up                      # SiLU(gate) * up
    acc_sc[...] += jnp.dot(act.astype(wd_ref.dtype), wd_ref[...],
                           preferred_element_type=jnp.float32)

    @pl.when(j == pl.num_programs(1) - 1)
    def _():
        out_ref[...] = (acc_sc[...] + bd_ref[...] + res_sc[...]).astype(out_ref.dtype)


def bottom_fused(attn_flat, res_flat, params, eps=1e-5):
    R, H = res_flat.shape
    inter = params["wd"].shape[0]

    # Row tile <= 256 (bounds live [tr,H]/[tr,ti] intermediates, v7x-friendly);
    # a partial trailing block is allowed, so odd R still pipelines.
    tr = R if R <= 256 else 256
    # Intermediate tile: 128-multiple divisor of inter, else whole inter.
    ti = _largest_divisor(inter, (512, 256, 128))
    n_j = inter // ti

    kernel = functools.partial(_bottom_kernel, eps=eps)
    row_spec = pl.BlockSpec((tr, H), lambda r, j: (r, 0))

    def resident(shape):
        # constant block index -> fetched once, stays in VMEM across grid steps.
        # TODO(synk): on v7x consider pipeline_mode=pl.Buffered(1) here to avoid
        # double-buffering blocks whose index never changes.
        return pl.BlockSpec(shape, lambda r, j: (0, 0))

    isz = jnp.dtype(res_flat.dtype).itemsize
    wisz = jnp.dtype(params["wo"].dtype).itemsize
    resident_bytes = wisz * (H * H + 4 * H)
    stream_bytes = wisz * (2 * H * ti + 2 * ti + ti * H)
    row_bytes = isz * 3 * tr * H
    scratch_bytes = 4 * 3 * tr * H
    cost = pl.CostEstimate(
        flops=2 * R * H * H + 4 * R * H * inter + 2 * R * inter * H,
        transcendentals=R * inter,                         # logistic
        bytes_accessed=isz * 3 * R * H
        + wisz * (H * H + 3 * H * inter + 4 * H + 2 * inter),
    )

    # TODO(synk): for very large H (out_proj weight [H,H] exceeding VMEM) add a
    # third grid axis tiling the out_proj contraction as well.
    return pl.pallas_call(
        kernel,
        out_shape=jax.ShapeDtypeStruct((R, H), res_flat.dtype),
        grid=(pl.cdiv(R, tr), n_j),
        in_specs=[
            row_spec, row_spec,
            resident((H, H)), resident((1, H)),
            resident((1, H)), resident((1, H)),
            pl.BlockSpec((H, ti), lambda r, j: (0, j)),
            pl.BlockSpec((1, ti), lambda r, j: (0, j)),
            pl.BlockSpec((H, ti), lambda r, j: (0, j)),
            pl.BlockSpec((1, ti), lambda r, j: (0, j)),
            pl.BlockSpec((ti, H), lambda r, j: (j, 0)),
            resident((1, H)),
        ],
        out_specs=row_spec,
        scratch_shapes=[pltpu.VMEM((tr, H), jnp.float32)] * 3,
        compiler_params=pltpu.CompilerParams(
            dimension_semantics=("parallel", "arbitrary"),
            vmem_limit_bytes=_vmem_limit(
                2 * (row_bytes + resident_bytes + stream_bytes) + scratch_bytes),
        ),
        cost_estimate=cost,
    )(attn_flat, res_flat,
      params["wo"], params["bo"], params["ln_g"], params["ln_b"],
      params["wg"], params["bg"], params["wu"], params["bu"],
      params["wd"], params["bd"])


# ----------------------------------------------------------------------------
# Wrapper reproducing LayerBottom.forward
# ----------------------------------------------------------------------------
def layer_bottom_forward(residual, q, ks, vs, params, group_size):
    B, S, H = residual.shape
    attn = sdpa_gqa_fused_layout(q, ks, vs, group_size)       # [B, S, H]
    out = bottom_fused(attn.reshape(B * S, H), residual.reshape(B * S, H), params)
    return out.reshape(B, S, H)


def init_params(key, hidden, inter, dtype=jnp.float32):
    ks = jax.random.split(key, 6)
    scl = 0.05

    def lin(k, din, dout):
        kw, kb = jax.random.split(k)
        return (jax.random.normal(kw, (din, dout), jnp.float32).astype(dtype) * scl,
                jax.random.normal(kb, (1, dout), jnp.float32).astype(dtype) * scl)

    wo, bo = lin(ks[0], hidden, hidden)
    wg, bg = lin(ks[1], hidden, inter)
    wu, bu = lin(ks[2], hidden, inter)
    wd, bd = lin(ks[3], inter, hidden)
    return dict(wo=wo, bo=bo,
                ln_g=jnp.ones((1, hidden), jnp.float32),
                ln_b=jnp.zeros((1, hidden), jnp.float32),
                wg=wg, bg=bg, wu=wu, bu=bu, wd=wd, bd=bd)


def _reference(residual, q, ks, vs, params, group, eps=1e-5):
    B, NH, S, HD = q.shape
    k_rep = jnp.repeat(ks, group, axis=1)
    v_rep = jnp.repeat(vs, group, axis=1)
    scale = 1.0 / math.sqrt(HD)
    s = jnp.einsum("bhqd,bhkd->bhqk", q, k_rep) * scale
    p = jax.nn.softmax(s, axis=-1)
    attn = jnp.einsum("bhqk,bhkd->bhqd", p, v_rep)
    attn = jnp.transpose(attn, (0, 2, 1, 3)).reshape(B, S, NH * HD)
    x = attn @ params["wo"] + params["bo"]
    h = x + residual
    resid = h
    mu = h.mean(-1, keepdims=True)
    var = ((h - mu) ** 2).mean(-1, keepdims=True)
    hn = (h - mu) / jnp.sqrt(var + eps) * params["ln_g"] + params["ln_b"]
    gate = hn @ params["wg"] + params["bg"]
    up = hn @ params["wu"] + params["bu"]
    act = gate * jax.nn.sigmoid(gate) * up
    mlp = act @ params["wd"] + params["bd"]
    return mlp + resid


if __name__ == "__main__":
    # small config: 2 batch, 4 query heads, 2 kv heads, head_dim 8, seq 8
    B, NH, NKV, HD, S = 2, 4, 2, 8, 8
    HIDDEN = NH * HD            # 32
    INTER = 64
    GROUP = NH // NKV

    key = jax.random.PRNGKey(0)
    k0, k1, k2, k3, kp = jax.random.split(key, 5)
    residual = jax.random.normal(k0, (B, S, HIDDEN), jnp.float32)
    q = jax.random.normal(k1, (B, NH, S, HD), jnp.float32)
    ksrc = jax.random.normal(k2, (B, NKV, S, HD), jnp.float32)
    vsrc = jax.random.normal(k3, (B, NKV, S, HD), jnp.float32)
    params = init_params(kp, HIDDEN, INTER)

    out = layer_bottom_forward(residual, q, ksrc, vsrc, params, GROUP)
    jax.block_until_ready(out)
    assert out.shape == (B, S, HIDDEN)

    ref = _reference(residual, q, ksrc, vsrc, params, GROUP)
    err = float(jnp.max(jnp.abs(out - ref)))
    assert jnp.allclose(out, ref, rtol=2e-2, atol=2e-2), f"max abs err {err}"
    print("KERNEL_OK")
</pallas_src>

<mosaic_0001>
module attributes {stable_mosaic.version = 11 : i64} {
  func.func @_attn_kernel(%arg0: i32, %arg1: i32, %arg2: i32, %arg3: memref<1x4x8x8xf32, #tpu.memory_space<vmem>>, %arg4: memref<1x2x8x8xf32, #tpu.memory_space<vmem>>, %arg5: memref<1x2x8x8xf32, #tpu.memory_space<vmem>>, %arg6: memref<1x8x32xf32, #tpu.memory_space<vmem>>, %arg7: memref<2x16x1xf32, #tpu.memory_space<vmem>>, %arg8: memref<2x16x1xf32, #tpu.memory_space<vmem>>, %arg9: memref<2x16x8xf32, #tpu.memory_space<vmem>>) attributes {dimension_semantics = [#tpu.dimension_semantics<parallel>, #tpu.dimension_semantics<parallel>, #tpu.dimension_semantics<arbitrary>], iteration_bounds = array<i64: 2, 1, 1>, scalar_prefetch = 0 : i64, scratch_operands = 3 : i64, tpu.core_type = #tpu.core_type<tc>, window_params = [{transform_indices = @transform_0, window_bounds = array<i64: 1, 4, 8, 8>}, {transform_indices = @transform_1, window_bounds = array<i64: 1, 2, 8, 8>}, {transform_indices = @transform_2, window_bounds = array<i64: 1, 2, 8, 8>}, {transform_indices = @transform_3, window_bounds = array<i64: 1, 8, 32>}]} {
    %c0_i32 = arith.constant 0 : i32
    %0 = arith.cmpi eq, %arg2, %c0_i32 : i32
    %1 = arith.extui %0 : i1 to i32
    %c0_i32_0 = arith.constant 0 : i32
    %2 = arith.cmpi ne, %1, %c0_i32_0 : i32
    scf.if %2 {
      %cst_69 = arith.constant 0xFF800000 : f32
      %88 = vector.broadcast %cst_69 : f32 to vector<2x16x1xf32>
      %c0_70 = arith.constant 0 : index
      %c0_71 = arith.constant 0 : index
      %c0_72 = arith.constant 0 : index
      %89 = vector.load %arg7[%c0_70, %c0_71, %c0_72] : memref<2x16x1xf32, #tpu.memory_space<vmem>>, vector<2x16x1xf32>
      tpu.vector_store %arg7[%c0_70, %c0_71, %c0_72], %88 {strides = array<i32>} : memref<2x16x1xf32, #tpu.memory_space<vmem>>, vector<2x16x1xf32>,
      %cst_73 = arith.constant 0.000000e+00 : f32
      %90 = vector.broadcast %cst_73 : f32 to vector<2x16x1xf32>
      %c0_74 = arith.constant 0 : index
      %c0_75 = arith.constant 0 : index
      %c0_76 = arith.constant 0 : index
      %91 = vector.load %arg8[%c0_74, %c0_75, %c0_76] : memref<2x16x1xf32, #tpu.memory_space<vmem>>, vector<2x16x1xf32>
      tpu.vector_store %arg8[%c0_74, %c0_75, %c0_76], %90 {strides = array<i32>} : memref<2x16x1xf32, #tpu.memory_space<vmem>>, vector<2x16x1xf32>,
      %cst_77 = arith.constant 0.000000e+00 : f32
      %92 = vector.broadcast %cst_77 : f32 to vector<2x16x8xf32>
      %c0_78 = arith.constant 0 : index
      %c0_79 = arith.constant 0 : index
      %c0_80 = arith.constant 0 : index
      %93 = vector.load %arg9[%c0_78, %c0_79, %c0_80] : memref<2x16x8xf32, #tpu.memory_space<vmem>>, vector<2x16x8xf32>
      tpu.vector_store %arg9[%c0_78, %c0_79, %c0_80], %92 {strides = array<i32>} : memref<2x16x8xf32, #tpu.memory_space<vmem>>, vector<2x16x8xf32>,
    } else {
    }
    %c0 = arith.constant 0 : index
    %c0_1 = arith.constant 0 : index
    %c0_2 = arith.constant 0 : index
    %c0_3 = arith.constant 0 : index
    %3 = vector.load %arg3[%c0, %c0_1, %c0_2, %c0_3] : memref<1x4x8x8xf32, #tpu.memory_space<vmem>>, vector<1x2x8x8xf32>
    %4 = vector.shape_cast %3 : vector<1x2x8x8xf32> to vector<2x8x8xf32>
    %cst = arith.constant 0.353553385 : f32
    %5 = vector.broadcast %cst : f32 to vector<2x8x8xf32>
    %6 = arith.mulf %4, %5 : vector<2x8x8xf32>
    %7 = vector.shape_cast %6 : vector<2x8x8xf32> to vector<16x8xf32>
    %c0_4 = arith.constant 0 : index
    %c0_5 = arith.constant 0 : index
    %c0_6 = arith.constant 0 : index
    %c0_7 = arith.constant 0 : index
    %8 = vector.load %arg4[%c0_4, %c0_5, %c0_6, %c0_7] : memref<1x2x8x8xf32, #tpu.memory_space<vmem>>, vector<1x1x8x8xf32>
    %9 = vector.shape_cast %8 : vector<1x1x8x8xf32> to vector<8x8xf32>
    %c0_8 = arith.constant 0 : index
    %c0_9 = arith.constant 0 : index
    %c0_10 = arith.constant 0 : index
    %c0_11 = arith.constant 0 : index
    %10 = vector.load %arg5[%c0_8, %c0_9, %c0_10, %c0_11] : memref<1x2x8x8xf32, #tpu.memory_space<vmem>>, vector<1x1x8x8xf32>
    %11 = vector.shape_cast %10 : vector<1x1x8x8xf32> to vector<8x8xf32>
    %cst_12 = arith.constant dense<0.000000e+00> : vector<16x8xf32>
    %12 = tpu.matmul %7, %9, %cst_12 {dimension_numbers = #tpu.dot_dimension_numbers<[1], [1], [0], [0], [0, 0, 1, 0], [], []>} : vector<16x8xf32>, vector<8x8xf32>, vector<16x8xf32> -> vector<16x8xf32>
    %c0_13 = arith.constant 0 : index
    %c0_14 = arith.constant 0 : index
    %c0_15 = arith.constant 0 : index
    %13 = vector.load %arg7[%c0_13, %c0_14, %c0_15] : memref<2x16x1xf32, #tpu.memory_space<vmem>>, vector<1x16x1xf32>
    %14 = vector.shape_cast %13 : vector<1x16x1xf32> to vector<16x1xf32>
    %cst_16 = arith.constant dense<0xFF800000> : vector<16xf32>
    %15 = vector.multi_reduction <maximumf>, %12, %cst_16 [1] : vector<16x8xf32> to vector<16xf32>
    %16 = vector.shape_cast %15 : vector<16xf32> to vector<16x1xf32>
    %17 = arith.maximumf %14, %16 : vector<16x1xf32>
    %18 = arith.subf %14, %17 : vector<16x1xf32>
    %19 = math.exp %18 : vector<16x1xf32>
    %20 = vector.broadcast %17 : vector<16x1xf32> to vector<16x8xf32>
    %21 = arith.subf %12, %20 : vector<16x8xf32>
    %22 = math.exp %21 : vector<16x8xf32>
    %c0_17 = arith.constant 0 : index
    %c0_18 = arith.constant 0 : index
    %c0_19 = arith.constant 0 : index
    %23 = vector.load %arg8[%c0_17, %c0_18, %c0_19] : memref<2x16x1xf32, #tpu.memory_space<vmem>>, vector<1x16x1xf32>
    %24 = vector.shape_cast %23 : vector<1x16x1xf32> to vector<16x1xf32>
    %25 = arith.mulf %19, %24 : vector<16x1xf32>
    %cst_20 = arith.constant dense<0.000000e+00> : vector<16xf32>
    %26 = vector.multi_reduction <add>, %22, %cst_20 [1] : vector<16x8xf32> to vector<16xf32>
    %27 = vector.shape_cast %26 : vector<16xf32> to vector<16x1xf32>
    %28 = arith.addf %25, %27 : vector<16x1xf32>
    %c0_21 = arith.constant 0 : index
    %c0_22 = arith.constant 0 : index
    %c0_23 = arith.constant 0 : index
    %29 = vector.load %arg8[%c0_21, %c0_22, %c0_23] : memref<2x16x1xf32, #tpu.memory_space<vmem>>, vector<1x16x1xf32>
    %30 = vector.shape_cast %29 : vector<1x16x1xf32> to vector<16x1xf32>
    %31 = vector.shape_cast %28 : vector<16x1xf32> to vector<1x16x1xf32>
    tpu.vector_store %arg8[%c0_21, %c0_22, %c0_23], %31 {strides = array<i32>} : memref<2x16x1xf32, #tpu.memory_space<vmem>>, vector<1x16x1xf32>,
    %c0_24 = arith.constant 0 : index
    %c0_25 = arith.constant 0 : index
    %c0_26 = arith.constant 0 : index
    %32 = vector.load %arg9[%c0_24, %c0_25, %c0_26] : memref<2x16x8xf32, #tpu.memory_space<vmem>>, vector<1x16x8xf32>
    %33 = vector.shape_cast %32 : vector<1x16x8xf32> to vector<16x8xf32>
    %34 = vector.broadcast %19 : vector<16x1xf32> to vector<16x8xf32>
    %35 = arith.mulf %34, %33 : vector<16x8xf32>
    %cst_27 = arith.constant dense<0.000000e+00> : vector<16x8xf32>
    %36 = tpu.matmul %22, %11, %cst_27 {dimension_numbers = #tpu.dot_dimension_numbers<[1], [0], [0], [1], [0, 0, 1, 1], [], []>} : vector<16x8xf32>, vector<8x8xf32>, vector<16x8xf32> -> vector<16x8xf32>
    %37 = arith.addf %35, %36 : vector<16x8xf32>
    %c0_28 = arith.constant 0 : index
    %c0_29 = arith.constant 0 : index
    %c0_30 = arith.constant 0 : index
    %38 = vector.load %arg9[%c0_28, %c0_29, %c0_30] : memref<2x16x8xf32, #tpu.memory_space<vmem>>, vector<1x16x8xf32>
    %39 = vector.shape_cast %38 : vector<1x16x8xf32> to vector<16x8xf32>
    %40 = vector.shape_cast %37 : vector<16x8xf32> to vector<1x16x8xf32>
    tpu.vector_store %arg9[%c0_28, %c0_29, %c0_30], %40 {strides = array<i32>} : memref<2x16x8xf32, #tpu.memory_space<vmem>>, vector<1x16x8xf32>,
    %c0_31 = arith.constant 0 : index
    %c0_32 = arith.constant 0 : index
    %c0_33 = arith.constant 0 : index
    %41 = vector.load %arg7[%c0_31, %c0_32, %c0_33] : memref<2x16x1xf32, #tpu.memory_space<vmem>>, vector<1x16x1xf32>
    %42 = vector.shape_cast %41 : vector<1x16x1xf32> to vector<16x1xf32>
    %43 = vector.shape_cast %17 : vector<16x1xf32> to vector<1x16x1xf32>
    tpu.vector_store %arg7[%c0_31, %c0_32, %c0_33], %43 {strides = array<i32>} : memref<2x16x1xf32, #tpu.memory_space<vmem>>, vector<1x16x1xf32>,
    %c0_34 = arith.constant 0 : index
    %c2 = arith.constant 2 : index
    %c0_35 = arith.constant 0 : index
    %c0_36 = arith.constant 0 : index
    %44 = vector.load %arg3[%c0_34, %c2, %c0_35, %c0_36] : memref<1x4x8x8xf32, #tpu.memory_space<vmem>>, vector<1x2x8x8xf32>
    %45 = vector.shape_cast %44 : vector<1x2x8x8xf32> to vector<2x8x8xf32>
    %cst_37 = arith.constant 0.353553385 : f32
    %46 = vector.broadcast %cst_37 : f32 to vector<2x8x8xf32>
    %47 = arith.mulf %45, %46 : vector<2x8x8xf32>
    %48 = vector.shape_cast %47 : vector<2x8x8xf32> to vector<16x8xf32>
    %c0_38 = arith.constant 0 : index
    %c1 = arith.constant 1 : index
    %c0_39 = arith.constant 0 : index
    %c0_40 = arith.constant 0 : index
    %49 = vector.load %arg4[%c0_38, %c1, %c0_39, %c0_40] : memref<1x2x8x8xf32, #tpu.memory_space<vmem>>, vector<1x1x8x8xf32>
    %50 = vector.shape_cast %49 : vector<1x1x8x8xf32> to vector<8x8xf32>
    %c0_41 = arith.constant 0 : index
    %c1_42 = arith.constant 1 : index
    %c0_43 = arith.constant 0 : index
    %c0_44 = arith.constant 0 : index
    %51 = vector.load %arg5[%c0_41, %c1_42, %c0_43, %c0_44] : memref<1x2x8x8xf32, #tpu.memory_space<vmem>>, vector<1x1x8x8xf32>
    %52 = vector.shape_cast %51 : vector<1x1x8x8xf32> to vector<8x8xf32>
    %cst_45 = arith.constant dense<0.000000e+00> : vector<16x8xf32>
    %53 = tpu.matmul %48, %50, %cst_45 {dimension_numbers = #tpu.dot_dimension_numbers<[1], [1], [0], [0], [0, 0, 1, 0], [], []>} : vector<16x8xf32>, vector<8x8xf32>, vector<16x8xf32> -> vector<16x8xf32>
    %c1_46 = arith.constant 1 : index
    %c0_47 = arith.constant 0 : index
    %c0_48 = arith.constant 0 : index
    %54 = vector.load %arg7[%c1_46, %c0_47, %c0_48] : memref<2x16x1xf32, #tpu.memory_space<vmem>>, vector<1x16x1xf32>
    %55 = vector.shape_cast %54 : vector<1x16x1xf32> to vector<16x1xf32>
    %cst_49 = arith.constant dense<0xFF800000> : vector<16xf32>
    %56 = vector.multi_reduction <maximumf>, %53, %cst_49 [1] : vector<16x8xf32> to vector<16xf32>
    %57 = vector.shape_cast %56 : vector<16xf32> to vector<16x1xf32>
    %58 = arith.maximumf %55, %57 : vector<16x1xf32>
    %59 = arith.subf %55, %58 : vector<16x1xf32>
    %60 = math.exp %59 : vector<16x1xf32>
    %61 = vector.broadcast %58 : vector<16x1xf32> to vector<16x8xf32>
    %62 = arith.subf %53, %61 : vector<16x8xf32>
    %63 = math.exp %62 : vector<16x8xf32>
    %c1_50 = arith.constant 1 : index
    %c0_51 = arith.constant 0 : index
    %c0_52 = arith.constant 0 : index
    %64 = vector.load %arg8[%c1_50, %c0_51, %c0_52] : memref<2x16x1xf32, #tpu.memory_space<vmem>>, vector<1x16x1xf32>
    %65 = vector.shape_cast %64 : vector<1x16x1xf32> to vector<16x1xf32>
    %66 = arith.mulf %60, %65 : vector<16x1xf32>
    %cst_53 = arith.constant dense<0.000000e+00> : vector<16xf32>
    %67 = vector.multi_reduction <add>, %63, %cst_53 [1] : vector<16x8xf32> to vector<16xf32>
    %68 = vector.shape_cast %67 : vector<16xf32> to vector<16x1xf32>
    %69 = arith.addf %66, %68 : vector<16x1xf32>
    %c1_54 = arith.constant 1 : index
    %c0_55 = arith.constant 0 : index
    %c0_56 = arith.constant 0 : index
    %70 = vector.load %arg8[%c1_54, %c0_55, %c0_56] : memref<2x16x1xf32, #tpu.memory_space<vmem>>, vector<1x16x1xf32>
    %71 = vector.shape_cast %70 : vector<1x16x1xf32> to vector<16x1xf32>
    %72 = vector.shape_cast %69 : vector<16x1xf32> to vector<1x16x1xf32>
    tpu.vector_store %arg8[%c1_54, %c0_55, %c0_56], %72 {strides = array<i32>} : memref<2x16x1xf32, #tpu.memory_space<vmem>>, vector<1x16x1xf32>,
    %c1_57 = arith.constant 1 : index
    %c0_58 = arith.constant 0 : index
    %c0_59 = arith.constant 0 : index
    %73 = vector.load %arg9[%c1_57, %c0_58, %c0_59] : memref<2x16x8xf32, #tpu.memory_space<vmem>>, vector<1x16x8xf32>
    %74 = vector.shape_cast %73 : vector<1x16x8xf32> to vector<16x8xf32>
    %75 = vector.broadcast %60 : vector<16x1xf32> to vector<16x8xf32>
    %76 = arith.mulf %75, %74 : vector<16x8xf32>
    %cst_60 = arith.constant dense<0.000000e+00> : vector<16x8xf32>
    %77 = tpu.matmul %63, %52, %cst_60 {dimension_numbers = #tpu.dot_dimension_numbers<[1], [0], [0], [1], [0, 0, 1, 1], [], []>} : vector<16x8xf32>, vector<8x8xf32>, vector<16x8xf32> -> vector<16x8xf32>
    %78 = arith.addf %76, %77 : vector<16x8xf32>
    %c1_61 = arith.constant 1 : index
    %c0_62 = arith.constant 0 : index
    %c0_63 = arith.constant 0 : index
    %79 = vector.load %arg9[%c1_61, %c0_62, %c0_63] : memref<2x16x8xf32, #tpu.memory_space<vmem>>, vector<1x16x8xf32>
    %80 = vector.shape_cast %79 : vector<1x16x8xf32> to vector<16x8xf32>
    %81 = vector.shape_cast %78 : vector<16x8xf32> to vector<1x16x8xf32>
    tpu.vector_store %arg9[%c1_61, %c0_62, %c0_63], %81 {strides = array<i32>} : memref<2x16x8xf32, #tpu.memory_space<vmem>>, vector<1x16x8xf32>,
    %c1_64 = arith.constant 1 : index
    %c0_65 = arith.constant 0 : index
    %c0_66 = arith.constant 0 : index
    %82 = vector.load %arg7[%c1_64, %c0_65, %c0_66] : memref<2x16x1xf32, #tpu.memory_space<vmem>>, vector<1x16x1xf32>
    %83 = vector.shape_cast %82 : vector<1x16x1xf32> to vector<16x1xf32>
    %84 = vector.shape_cast %58 : vector<16x1xf32> to vector<1x16x1xf32>
    tpu.vector_store %arg7[%c1_64, %c0_65, %c0_66], %84 {strides = array<i32>} : memref<2x16x1xf32, #tpu.memory_space<vmem>>, vector<1x16x1xf32>,
    %c0_i32_67 = arith.constant 0 : i32
    %85 = arith.cmpi eq, %arg2, %c0_i32_67 : i32
    %86 = arith.extui %85 : i1 to i32
    %c0_i32_68 = arith.constant 0 : i32
    %87 = arith.cmpi ne, %86, %c0_i32_68 : i32
    scf.if %87 {
      %c0_69 = arith.constant 0 : index
      %c0_70 = arith.constant 0 : index
      %c0_71 = arith.constant 0 : index
      %88 = vector.load %arg9[%c0_69, %c0_70, %c0_71] : memref<2x16x8xf32, #tpu.memory_space<vmem>>, vector<1x16x8xf32>
      %89 = vector.shape_cast %88 : vector<1x16x8xf32> to vector<16x8xf32>
      %c0_72 = arith.constant 0 : index
      %c0_73 = arith.constant 0 : index
      %c0_74 = arith.constant 0 : index
      %90 = vector.load %arg8[%c0_72, %c0_73, %c0_74] : memref<2x16x1xf32, #tpu.memory_space<vmem>>, vector<1x16x1xf32>
      %91 = vector.shape_cast %90 : vector<1x16x1xf32> to vector<16x1xf32>
      %92 = tpu.reciprocal %91 {approx = true} : vector<16x1xf32> -> vector<16x1xf32>
      %93 = vector.broadcast %92 : vector<16x1xf32> to vector<16x8xf32>
      %94 = arith.mulf %89, %93 : vector<16x8xf32>
      %95 = vector.extract_strided_slice %94 {offsets = [0, 0], sizes = [8, 8], strides = [1, 1]} : vector<16x8xf32> to vector<8x8xf32>
      %96 = vector.extract_strided_slice %94 {offsets = [8, 0], sizes = [8, 8], strides = [1, 1]} : vector<16x8xf32> to vector<8x8xf32>
      %97 = tpu.concatenate %95, %96 in 1 : vector<8x8xf32>, vector<8x8xf32> -> vector<8x16xf32>
      %c0_75 = arith.constant 0 : index
      %c0_76 = arith.constant 0 : index
      %c0_77 = arith.constant 0 : index
      %98 = vector.load %arg6[%c0_75, %c0_76, %c0_77] : memref<1x8x32xf32, #tpu.memory_space<vmem>>, vector<1x8x16xf32>
      %99 = vector.shape_cast %98 : vector<1x8x16xf32> to vector<8x16xf32>
      %100 = vector.shape_cast %97 : vector<8x16xf32> to vector<1x8x16xf32>
      tpu.vector_store %arg6[%c0_75, %c0_76, %c0_77], %100 {strides = array<i32>} : memref<1x8x32xf32, #tpu.memory_space<vmem>>, vector<1x8x16xf32>,
      %c1_78 = arith.constant 1 : index
      %c0_79 = arith.constant 0 : index
      %c0_80 = arith.constant 0 : index
      %101 = vector.load %arg9[%c1_78, %c0_79, %c0_80] : memref<2x16x8xf32, #tpu.memory_space<vmem>>, vector<1x16x8xf32>
      %102 = vector.shape_cast %101 : vector<1x16x8xf32> to vector<16x8xf32>
      %c1_81 = arith.constant 1 : index
      %c0_82 = arith.constant 0 : index
      %c0_83 = arith.constant 0 : index
      %103 = vector.load %arg8[%c1_81, %c0_82, %c0_83] : memref<2x16x1xf32, #tpu.memory_space<vmem>>, vector<1x16x1xf32>
      %104 = vector.shape_cast %103 : vector<1x16x1xf32> to vector<16x1xf32>
      %105 = tpu.reciprocal %104 {approx = true} : vector<16x1xf32> -> vector<16x1xf32>
      %106 = vector.broadcast %105 : vector<16x1xf32> to vector<16x8xf32>
      %107 = arith.mulf %102, %106 : vector<16x8xf32>
      %108 = vector.extract_strided_slice %107 {offsets = [0, 0], sizes = [8, 8], strides = [1, 1]} : vector<16x8xf32> to vector<8x8xf32>
      %109 = vector.extract_strided_slice %107 {offsets = [8, 0], sizes = [8, 8], strides = [1, 1]} : vector<16x8xf32> to vector<8x8xf32>
      %110 = tpu.concatenate %108, %109 in 1 : vector<8x8xf32>, vector<8x8xf32> -> vector<8x16xf32>
      %c0_84 = arith.constant 0 : index
      %c0_85 = arith.constant 0 : index
      %c16 = arith.constant 16 : index
      %111 = vector.load %arg6[%c0_84, %c0_85, %c16] : memref<1x8x32xf32, #tpu.memory_space<vmem>>, vector<1x8x16xf32>
      %112 = vector.shape_cast %111 : vector<1x8x16xf32> to vector<8x16xf32>
      %113 = vector.shape_cast %110 : vector<8x16xf32> to vector<1x8x16xf32>
      tpu.vector_store %arg6[%c0_84, %c0_85, %c16], %113 {strides = array<i32>} : memref<1x8x32xf32, #tpu.memory_space<vmem>>, vector<1x8x16xf32>,
    } else {
    }
    return
  }
  func.func @transform_0(%arg0: i32, %arg1: i32, %arg2: i32) -> (i32, i32, i32, i32) {
    %c0_i32 = arith.constant 0 : i32
    %c0_i32_0 = arith.constant 0 : i32
    %c0_i32_1 = arith.constant 0 : i32
    return %arg0, %arg1, %c0_i32, %c0_i32_0 : i32, i32, i32, i32
  }
  func.func @transform_1(%arg0: i32, %arg1: i32, %arg2: i32) -> (i32, i32, i32, i32) {
    %c0_i32 = arith.constant 0 : i32
    %c0_i32_0 = arith.constant 0 : i32
    return %arg0, %arg1, %arg2, %c0_i32 : i32, i32, i32, i32
  }
  func.func @transform_2(%arg0: i32, %arg1: i32, %arg2: i32) -> (i32, i32, i32, i32) {
    %c0_i32 = arith.constant 0 : i32
    %c0_i32_0 = arith.constant 0 : i32
    return %arg0, %arg1, %arg2, %c0_i32 : i32, i32, i32, i32
  }
  func.func @transform_3(%arg0: i32, %arg1: i32, %arg2: i32) -> (i32, i32, i32) {
    %c0_i32 = arith.constant 0 : i32
    %c0_i32_0 = arith.constant 0 : i32
    return %arg0, %c0_i32, %arg1 : i32, i32, i32
  }
}

</mosaic_0001>

<bundles_post_ra>
// kernel: tpu_custom_call.1
= control target key start
LH: loop header
LB: loop body
LE: loop exit
PB: predicated region body
PF: predicated region fallthrough
CT: control target
= control target key end

     0   :  { %s1380_s0 = inlined_call_operand.hbm [shape: f32[2,4,8,8], index: 0, kind: input, shape index: {}]   ;;  %s1381_s1 = inlined_call_operand.hbm [shape: f32[2,2,8,8], index: 1, kind: input, shape index: {}]   ;;  %s1382_s2 = inlined_call_operand.hbm [shape: f32[2,2,8,8], index: 2, kind: input, shape index: {}]   ;;  %s1383_s3 = inlined_call_operand.hbm [shape: f32[2,8,32], index: 3, kind: output, shape index: {}]  }
   0x1   :  { %1386 = sst [smem:[#allocation18_spill]] %s1381_s1 }
   0x2   :  { %8 = vsyncpa [#allocation6], 0 }
   0x3   :  { %10 = vsyncpa [#allocation6 + $0x1], 0 }
   0x4   :  { %11 = vsyncpa [#allocation9], 0 }
   0x5   :  { %13 = vsyncpa [#allocation9 + $0x1], 0 }
   0x6   :  { %14 = vsyncpa [#allocation7], 0 }
   0x7   :  { %16 = vsyncpa [#allocation7 + $0x1], 0  ;;  %s1166_s12 = smov 0   ;;  %s1168_s13 = smov 0  }
   0x8   :  { %s1170_s14 = smov 0   ;;  %s1172_s15 = smov 0  }
   0x9   :  { %s1174_s16 = smov 0   ;;  %s1176_s17 = smov 0  }
   0xa LB: > { %1387 = sst [smem:[#allocation15_spill]] %s1125_s14  ;;  %s1197_s18 = sadd.s32 4294967295, %s1137_s17   ;;  %s1137_s17 = sphi %s1176_s17, %s22_s17   ;;  %s1133_s16 = sphi %s1174_s16, %s1402_s16   ;;  %s1129_s15 = sphi %s1172_s15, %s1401_s15   ;;  %s1125_s14 = sphi %s1170_s14, %s1397_s14   ;;  %s1121_s13 = sphi %s1168_s13, %s1400_s13   ;;  %s1117_s12 = sphi %s1166_s12, %s1399_s12  }
   0xb   : > { %s817_s19 = sadd.s32 4294967294, %s1137_s17   ;;  %s41_s20 = sadd.s32 1, %s1133_s16 }
   0xc   : > { %s50_s21 = sadd.s32 1, %s1125_s14  ;;  %p43_p0 = scmp.ge.s32.totalorder %s41_s20, 2 }
   0xd   : > { %p57_p1 = scmp.ne.s32.totalorder %s1125_s14, %s1121_s13  ;;  %p58_p2 = scmp.eq.s32.totalorder %s1137_s17, 0 }
   0xe   : > { %p63_p3 = scmp.ne.s32.totalorder %s1121_s13, %s1117_s12  ;;  %s1404_s20 = smov (%p43_p0, %s41_s20), 0 }
   0xf   : > { %1388 = sst [smem:[#allocation16_spill]] %s1404_s20  ;;  %p1209_p4 = por %p58_p2, %p57_p1 }
  0x10   : > { %p64_p5 = scmp.eq.s32.totalorder %s1197_s18, 0  ;;  %s45_s23 = ssub.s32 %s1133_s16, %s1404_s20 }
  0x11   : > { %p149_p6 = scmp.eq.s32.totalorder %s1197_s18, 1  ;;  %p48_p7 = scmp.eq.s32.totalorder %s45_s23, 0 }
  0x12   : > { %p1217_p8 = por %p64_p5, %p63_p3  ;;  %p155_p10 = scmp.eq.s32.totalorder %s817_s19, 1 }
  0x13   : > { %p1221_p9 = por %p149_p6, %p57_p1  ;;  %p819_p12 = scmp.ge.s32.totalorder %s1137_s17, 2 }
  0x14   : > { %s1226_s26 = scalar_select %p48_p7, %s1125_s14, %s50_s21  }
  0x15   : > { %p1228_p11 = por %p155_p10, %p63_p3  ;;  %p877_p13 = scmp.lt.s32.totalorder %s1137_s17, 2 }
  0x16   : > { %1392 = sst [smem:[#allocation17_spill]] %s1226_s26  ;;  %s1235_s28 = sand.u32 1, %s1125_s14  }
  0x17   : > { %p1239_p0 = pnand %p877_p13, %p1209_p4  ;;  %s199_s30 = sand.u32 1, %s1137_s17  }
  0x18   : > { %s823_s4 = sshll.u32 %s1235_s28, 4  ;;  %s853_s5 = sshll.u32 %s1133_s16, 4 }
  0x19   : > { %s203_s6 = scalar_lea.vmem [#allocation8], %s823_s4  ;;  %s1395_s1 = sld [smem:[#allocation18_spill]] }
  0x1a   : > { %s214_s7 = sshll.u32 %s203_s6, 4  ;;  %s236_s22 = scalar_lea.hbm %s1382_s2, %s853_s5  ;;  %s215_s7 = int_to_ptr.vmem [resolvable:$true] %s214_s7 }
  0x1b   : > { %s200_s23 = scalar_lea.sflag [#allocation9], %s199_s30  ;;  %s1139_s20 = smov 128  }
  0x1c   : > { %s1140_s26 = smov 8   ;;  %s237_s6 = sshll.u32 %s236_s22, 4  ;;  %s238_s6 = int_to_ptr.hbm [resolvable:$true] %s237_s6 }
  0x1d   : > { %s228_s14 = scalar_lea.vmem [#allocation10], %s823_s4  ;;  %p829_p1 = scmp.ge.s32.totalorder %s1137_s17, 1 }
  0x1e   : > { %s239_s8 = sshll.u32 %s228_s14, 4  ;;  %p247_p2 = scmp.lt.s32.totalorder %s1137_s17, 3  ;;  %s240_s8 = int_to_ptr.vmem [resolvable:$true] %s239_s8 }
  0x1f   : > { %s211_s10 = scalar_lea.hbm %s1395_s1, %s853_s5  ;;  %s820_s9 = sshll.u32 %s1235_s28, 5 }
  0x20   : > { %s212_s11 = sshll.u32 %s211_s10, 4  ;;  %p248_p3 = pnand %p829_p1, %p247_p2  ;;  %s213_s11 = int_to_ptr.hbm [resolvable:$true] %s212_s11 }
  0x21   : > { %869 = dma.hbm_to_vmem [thread:$0]  (!%p1239_p0), %s213_s11, 256, %s215_s7, %s200_s23, %s1139_s20, %s1139_s20, %s1140_s26  }
  0x22   : > { %s852_s10 = sshll.u32 %s1133_s16, 5  ;;  %s179_s1 = scalar_lea.vmem [#allocation5], %s820_s9 }
  0x23   : > { %s186_s30 = scalar_lea.hbm %s1380_s0, %s852_s10  ;;  %s189_s7 = sshll.u32 %s179_s1, 4  ;;  %s190_s7 = int_to_ptr.vmem [resolvable:$true] %s189_s7 }
  0x24   : > { %s187_s21 = sshll.u32 %s186_s30, 4  ;;  %s176_s4 = scalar_lea.sflag [#allocation6], %s1235_s28  ;;  %s188_s21 = int_to_ptr.hbm [resolvable:$true] %s187_s21 }
  0x25   : > { %866 = dma.hbm_to_vmem [thread:$0]  (!%p1239_p0), %s188_s21, 512, %s190_s7, %s176_s4, %s1139_s20, %s1139_s20, %s1140_s26  }
  0x26   : > { %872 = dma.hbm_to_vmem [thread:$0]  (!%p1239_p0), %s238_s6, 256, %s240_s8, %s200_s23, %s1139_s20, %s1139_s20, %s1140_s26  }
  0x27   : > { %251 = sbr.rel (%p248_p3) target bundleno = 956 (0x3bc), region = 32  ;;  %s1267_s14 = sand.u32 (!%p248_p3), 1, %s1121_s13  }
  0x28   : > { %s830_s11 = sshll.u32 (!%p248_p3), %s1267_s14, 5  ;;  %s254_s22 = scalar_lea.sflag (!%p248_p3), [#allocation6], %s1267_s14 }
  0x29   : > { %s257_s10 = scalar_lea.vmem (!%p248_p3), [#allocation5], %s830_s11 }
  0x2c   : > { %1104 = dma.done.wait (%p1217_p8), %s254_s22, 512  }
  0x2d   : > { %1106 = vsyncadd (%p1217_p8), %s254_s22, 4294966784  ;;  %s263_s1 = sand.u32 1, %s1197_s18   ;;  %s831_s20 = sshll.u32 %s1267_s14, 4 }
  0x2e   : > { %s264_s26 = scalar_lea.sflag [#allocation9], %s263_s1  ;;  %s267_s28 = scalar_lea.vmem [#allocation8], %s831_s20 }
  0x2f   : > { %1108 = dma.done.wait (%p1217_p8), %s264_s26, 512  }
  0x30   : > { %1110 = vsyncadd (%p1217_p8), %s264_s26, 4294966784  ;;  %vm327_vm0 = vcmask 64512   ;;  %v841_v0 = vld [vmem:[%s267_s28 + $0x8] sm:$0xff]  ;;  %v839_v1 = vld [vmem:[%s257_s10 + $0x10] sm:$0xff]  ;;  %vm318_vm1 = vcmask 7168   ;;  %v1141_v8 = vmov -inf  }
  0x31   : > { %843 = vmatpush.xpose.msk.msra.mxu2 %vm327_vm0, %v841_v0  ;;  %v470_v2 = vmul.f32 0.35355338, %v839_v1  ;;  %v840_v3 = vld [vmem:[%s257_s10 + $0x18] sm:$0xff]  ;;  %v336_v5 = vld [vmem:[%s267_s28] sm:$0xff]  ;;  %321 = vst.msk [vmem:[#allocation2 + $0x10] sm:$0xff] %vm318_vm1, %v1141_v8  ;;  %v333_v9 = vld [vmem:[%s257_s10 + $0x8] sm:$0xff] }
  0x32   : > { %v471_v4 = vmul.f32 0.35355338, %v840_v3  ;;  %v332_v6 = vld [vmem:[%s257_s10] sm:$0xff]  ;;  %834 = vmatpush.xpose.msk.msra.mxu0 %vm327_vm0, %v336_v5  ;;  %319 = vst.msk [vmem:[#allocation2] sm:$0xff] %vm318_vm1, %v1141_v8  ;;  %v335_v10 = vmul.f32 0.35355338, %v333_v9 }
  0x33   : > { %v334_v7 = vmul.f32 0.35355338, %v332_v6  ;;  %320 = vst.msk [vmem:[#allocation2 + $0x8] sm:$0xff] %vm318_vm1, %v1141_v8  ;;  %v1142_v15 = vmov 0   ;;  %v1143_v16 = vmov 0.0   ;;  %s1315_s18 = scalar_lea.vmem [#allocation10], %s831_s20 }
  0x34   : > { %844 = vmatmul.msk.f32.vlgmr.msra.gmra.mxu2 %vm327_vm0, %v470_v2  ;;  %322 = vst.msk [vmem:[#allocation2 + $0x18] sm:$0xff] %vm318_vm1, %v1141_v8  ;;  %934 = vset.pattern.permute.xlu1 %v1142_v15  ;;  %v842_v29 = vld [vmem:[%s1315_s18 + $0x8] sm:$0xff]  ;;  %v337_v0 = vld [vmem:[%s1315_s18] sm:$0xff]  ;;  %s1144_s24 = smov 8   ;;  %s1145_s29 = smov 16   ;;  %vm632_vm2 = vcmask 130048  }
  0x35   : > { %835 = vmatmul.msk.f32.vlgmr.msra.gmra.mxu0 %vm327_vm0, %v334_v7  ;;  %935 = vset.pattern.permute.xlu2 %v1142_v15  ;;  %326 = vst.msk [vmem:[#allocation3 + $0x18] sm:$0xff] %vm318_vm1, %v1143_v16  ;;  %s833_s23 = sshll.u32 %s1267_s14, 3  ;;  %s849_s8 = sshll.u32 %s1129_s15, 3  ;;  %vm661_vm3 = vcmask 261248  }
  0x36   : > { %936 = vset.pattern.permute.xlu0 %v1142_v15  ;;  %323 = vst.msk [vmem:[#allocation3] sm:$0xff] %vm318_vm1, %v1143_v16  ;;  %592 = vmatpush.msra.mxu3 %v842_v29  ;;  %s310_s6 = scalar_lea.vmem [#allocation11], %s833_s23  ;;  %s675_s5 = scalar_lea.hbm %s1383_s3, %s849_s8 }
  0x37   : > { %324 = vst.msk [vmem:[#allocation3 + $0x8] sm:$0xff] %vm318_vm1, %v1143_v16  ;;  %453 = vmatpush.msra.mxu1 %v337_v0  ;;  %s677_s30 = sshll.u32 %s310_s6, 4  ;;  %s679_s21 = sshll.u32 %s675_s5, 4  ;;  %s678_s30 = int_to_ptr.vmem [resolvable:$true] %s677_s30  ;;  %s680_s21 = int_to_ptr.hbm [resolvable:$true] %s679_s21 }
  0x38   : > { %325 = vst.msk [vmem:[#allocation3 + $0x10] sm:$0xff] %vm318_vm1, %v1143_v16  ;;  %v509_v17 = vld [vmem:[#allocation2 + $0x10] sm:$0xff]  ;;  %s664_s7 = scalar_lea.sflag [#allocation7], %s1267_s14  ;;  %s1065_s4 = sshra.s32 %s680_s21, 4  ;;  %s1066_s4 = int_to_ptr.hbm [resolvable:$true] %s1065_s4 }
  0x39   : > { %328 = vst.msk [vmem:[#allocation4] sm:$0xff] %vm327_vm0, %v1143_v16  ;;  %v371_v42 = vld [vmem:[#allocation2] sm:$0xff]  ;;  %s1067_s11 = scalar_lea.hbm %s1066_s4, 8  ;;  %s1071_s10 = scalar_lea.hbm %s1383_s3, 16 }
  0x3a   : > { %329 = vst.msk [vmem:[#allocation4 + $0x8] sm:$0xff] %vm327_vm0, %v1143_v16  ;;  %v372_v46 = vld [vmem:[#allocation2 + $0x8] sm:$0xff]  ;;  %p1068_p4 = scmp.ne.s32.totalorder %s1066_s4, %s1067_s11  ;;  %p1072_p7 = scmp.lt.s32.totalorder %s1066_s4, %s1383_s3 }
  0x3b   : > { %330 = vst.msk [vmem:[#allocation4 + $0x10] sm:$0xff] %vm327_vm0, %v1143_v16  ;;  %v510_v21 = vld [vmem:[#allocation2 + $0x18] sm:$0xff]  ;;  %p1073_p8 = scmp.lt.s32.totalorder %s1071_s10, %s1067_s11 }
  0x3c   : > { %845 = vmatmul.msk.f32.gmra.mxu2 %vm327_vm0, %v471_v4  ;;  %331 = vst.msk [vmem:[#allocation4 + $0x18] sm:$0xff] %vm327_vm0, %v1143_v16  ;;  %v543_v52 = vld [vmem:[#allocation3 + $0x18] sm:$0xff]  ;;  %p1069_p5 = pnand %p1068_p4, %p1221_p9 }
  0x3d   : > { %836 = vmatmul.msk.f32.gmra.mxu0 %vm327_vm0, %v335_v10  ;;  %p1074_p10 = por %p1073_p8, %p1072_p7 }
  0x3e   : > { %p1070_p6 = pneg %p1069_p5 }
  0x3f   : > { %v542_v59 = vld [vmem:[#allocation3 + $0x10] sm:$0xff] }
  0x40   : > { %p1075_p13 = pnand %p1074_p10, %p1070_p6 }
  0x43   : > { %v558_v5 = vld [vmem:[#allocation4 + $0x18] sm:$0xff] }
  0xb2   : > { %v1305_v25 = vpop.f32.mrf.mxu0 }
  0xb3   : > { %v373_v26 = vsel %vm327_vm0, %v1305_v25, -inf }
  0xb7   : > { %v502_v11 = vpop.f32.mrf.mxu2 }
  0xb8   : > { %v511_v12 = vsel %vm327_vm0, %v502_v11, -inf }
  0xb9   : > { %512 = vmax.xlane.f32.xlu0 %v511_v12 }
  0xba   : > { %v1309_v27 = vpop.f32.mrf.mxu0 }
  0xbb   : > { %v376_v28 = vsel %vm327_vm0, %v1309_v27, -inf }
  0xbf   : > { %v505_v13 = vpop.f32.mrf.mxu2 }
  0xc0   : > { %v514_v14 = vsel %vm327_vm0, %v505_v13, -inf }
  0xc1   : > { %515 = vmax.xlane.f32.xlu0 %v514_v14 }
 0x12c   : > { %v513_v18 = vpop.xlane.xlu0 %512 }
 0x12d   : > { %v517_v19 = vmax.f32 %v509_v17, %v513_v18 }
 0x12f   : > { %v519_v20 = vsub.f32 %v509_v17, %v517_v19  ;;  %604 = vst.msk [vmem:[#allocation2 + $0x10] sm:$0xff] %vm318_vm1, %v517_v19  ;;  %527 = vperm.xlu1 %934, %v517_v19   ;;  %v404_v19 = vld [vmem:[#allocation3 + $0x8] sm:$0xff] }
 0x131   : > { %v521_v56 = vmul.f32 1.442695, %v519_v20 }
 0x134   : > { %v516_v22 = vpop.xlane.xlu0 %515 }
 0x135   : > { %v518_v23 = vmax.f32 %v510_v21, %v516_v22 }
 0x137   : > { %v520_v24 = vsub.f32 %v510_v21, %v518_v23  ;;  %605 = vst.msk [vmem:[#allocation2 + $0x18] sm:$0xff] %vm318_vm1, %v518_v23  ;;  %532 = vperm.xlu2 %935, %v518_v23  }
 0x139   : > { %v523_v40 = vmul.f32 1.442695, %v520_v24 }
 0x159   : > { %374 = vmax.xlane.f32.xlu1 %v373_v26 }
 0x160   : > { %377 = vmax.xlane.f32.xlu2 %v376_v28 }
 0x191   : > { %v533_v30 = vpop.permute.xlu2 %532 }
 0x192   : > { %v536_v31 = vsub.f32 %v505_v13, %v533_v30  ;;  %v557_v30 = vld [vmem:[#allocation4 + $0x10] sm:$0xff] }
 0x194   : > { %v539_v32 = vmul.f32 1.442695, %v536_v31 }
 0x196   : > { %937 = vpow2.f32 %v539_v32 }
 0x19c   : > { %v938_v33 = vpop.eup %937 }
 0x19d   : > { %v549_v34 = vsel %vm327_vm0, %v938_v33, 0.0 }
 0x19e   : > { %550 = vadd.xlane.f32.xlu1 %v549_v34 }
 0x1a1   : > { %v528_v35 = vpop.permute.xlu1 %527 }
 0x1a2   : > { %v535_v36 = vsub.f32 %v502_v11, %v528_v35 }
 0x1a4   : > { %v537_v37 = vmul.f32 1.442695, %v535_v36  ;;  %v418_v36 = vld [vmem:[#allocation4] sm:$0xff] }
 0x1a6   : > { %939 = vpow2.f32 %v537_v37 }
 0x1a7   : > { %941 = vpow2.f32 %v523_v40 }
 0x1ac   : > { %v940_v38 = vpop.eup %939 }
 0x1ad   : > { %846 = vmatmul.msk.f32.vlgmr.msra.gmra.mxu3 %vm327_vm0, %v940_v38  ;;  %v546_v39 = vsel %vm327_vm0, %v940_v38, 0.0  ;;  %v942_v41 = vpop.eup %941 }
 0x1ae   : > { %547 = vadd.xlane.f32.xlu1 %v546_v39  ;;  %v545_v53 = vmul.f32 %v942_v41, %v543_v52 }
 0x1b5   : > { %847 = vmatmul.msk.f32.gmra.mxu3 %vm327_vm0, %v938_v33 }
 0x1c7   : > { %566 = vperm.xlu1 %934, %v942_v41   ;;  %v419_v41 = vld [vmem:[#allocation4 + $0x8] sm:$0xff] }
 0x1cc   : > { %v375_v43 = vpop.xlane.xlu1 %374 }
 0x1cd   : > { %v379_v44 = vmax.f32 %v371_v42, %v375_v43 }
 0x1cf   : > { %v381_v45 = vsub.f32 %v371_v42, %v379_v44  ;;  %465 = vst.msk [vmem:[#allocation2] sm:$0xff] %vm318_vm1, %v379_v44  ;;  %389 = vperm.xlu0 %936, %v379_v44  }
 0x1d1   : > { %v383_v17 = vmul.f32 1.442695, %v381_v45 }
 0x1d3   : > { %v378_v47 = vpop.xlane.xlu2 %377 }
 0x1d4   : > { %v380_v48 = vmax.f32 %v372_v46, %v378_v47 }
 0x1d6   : > { %v382_v49 = vsub.f32 %v372_v46, %v380_v48  ;;  %466 = vst.msk [vmem:[#allocation2 + $0x8] sm:$0xff] %vm318_vm1, %v380_v48  ;;  %394 = vperm.xlu2 %935, %v380_v48  }
 0x1d8   : > { %v385_v50 = vmul.f32 1.442695, %v382_v49 }
 0x1da   : > { %943 = vpow2.f32 %v385_v50 }
 0x1db   : > { %945 = vpow2.f32 %v521_v56 }
 0x1e0   : > { %v944_v51 = vpop.eup %943 }
 0x1e1   : > { %427 = vperm.xlu1 %934, %v944_v51   ;;  %v946_v58 = vpop.eup %945  ;;  %v406_v20 = vmul.f32 %v944_v51, %v404_v19 }
 0x1e2   : > { %v544_v60 = vmul.f32 %v946_v58, %v542_v59 }
 0x211   : > { %v551_v54 = vpop.xlane.xlu1 %550 }
 0x212   : > { %v553_v55 = vadd.f32 %v551_v54, %v545_v53 }
 0x214   : > { %555 = vst.msk [vmem:[#allocation3 + $0x18] sm:$0xff] %vm318_vm1, %v553_v55 }
 0x21b   : > { %v637_v57 = vld [vmem:[#allocation3 + $0x18] sm:$0xff] }
 0x21c   : > { %947 = vrcp.f32 %v637_v57 }
 0x221   : > { %v548_v61 = vpop.xlane.xlu1 %547 }
 0x222   : > { %v948_v62 = vpop.eup %947  ;;  %v552_v63 = vadd.f32 %v548_v61, %v544_v60 }
 0x223   : > { %647 = vperm.xlu2 %935, %v948_v62  }
 0x224   : > { %554 = vst.msk [vmem:[#allocation3 + $0x10] sm:$0xff] %vm318_vm1, %v552_v63 }
 0x230   : > { %v395_v1 = vpop.permute.xlu2 %394  ;;  %v594_v2 = vpop.f32.mrf.mxu3 }
 0x231   : > { %v398_v3 = vsub.f32 %v1309_v27, %v395_v1  ;;  %v636_v27 = vld [vmem:[#allocation3 + $0x10] sm:$0xff] }
 0x233   : > { %v401_v4 = vmul.f32 1.442695, %v398_v3 }
 0x235   : > { %949 = vpow2.f32 %v401_v4 }
 0x238   : > { %v597_v9 = vpop.f32.mrf.mxu3 }
 0x239   : > { %v567_v6 = vpop.permute.xlu1 %566 }
 0x23a   : > { %v570_v7 = vmul.f32 %v567_v6, %v558_v5 }
 0x23b   : > { %v950_v8 = vpop.eup %949 }
 0x23c   : > { %v601_v10 = vadd.f32 %v597_v9, %v570_v7  ;;  %v410_v11 = vsel %vm327_vm0, %v950_v8, 0.0 }
 0x23d   : > { %411 = vadd.xlane.f32.xlu0 %v410_v11 }
 0x23e   : > { %603 = vst.msk [vmem:[#allocation4 + $0x18] sm:$0xff] %vm327_vm0, %v601_v10 }
 0x241   : > { %v390_v12 = vpop.permute.xlu0 %389 }
 0x242   : > { %v397_v13 = vsub.f32 %v1305_v25, %v390_v12  ;;  %v403_v25 = vld [vmem:[#allocation3] sm:$0xff] }
 0x244   : > { %v399_v14 = vmul.f32 1.442695, %v397_v13 }
 0x245   : > { %v635_v44 = vld [vmem:[#allocation4 + $0x18] sm:$0xff] }
 0x246   : > { %951 = vpow2.f32 %v399_v14 }
 0x247   : > { %953 = vpow2.f32 %v383_v17 }
 0x24c   : > { %v952_v15 = vpop.eup %951 }
 0x24d   : > { %837 = vmatmul.msk.f32.vlgmr.msra.gmra.mxu1 %vm327_vm0, %v952_v15  ;;  %v407_v16 = vsel %vm327_vm0, %v952_v15, 0.0  ;;  %v954_v18 = vpop.eup %953 }
 0x24e   : > { %408 = vadd.xlane.f32.xlu2 %v407_v16  ;;  %v405_v26 = vmul.f32 %v954_v18, %v403_v25 }
 0x251   : > { %561 = vperm.xlu0 %936, %v946_v58  }
 0x253   : > { %v428_v42 = vpop.permute.xlu1 %427 }
 0x254   : > { %v431_v46 = vmul.f32 %v428_v42, %v419_v41 }
 0x255   : > { %838 = vmatmul.msk.f32.gmra.mxu1 %vm327_vm0, %v950_v8 }
 0x259   : > { %422 = vperm.xlu0 %936, %v954_v18  }
 0x27d   : > { %v648_v23 = vpop.permute.xlu2 %647 }
 0x27e   : > { %v651_v45 = vmul.f32 %v648_v23, %v635_v44 }
 0x2b0   : > { %v412_v21 = vpop.xlane.xlu0 %411 }
 0x2b1   : > { %v414_v22 = vadd.f32 %v412_v21, %v406_v20 }
 0x2b3   : > { %417 = vst.msk [vmem:[#allocation3 + $0x8] sm:$0xff] %vm318_vm1, %v414_v22 }
 0x2ba   : > { %v612_v24 = vld [vmem:[#allocation3 + $0x8] sm:$0xff] }
 0x2bb   : > { %955 = vrcp.f32 %v612_v24 }
 0x2bc   : > { %957 = vrcp.f32 %v636_v27 }
 0x2c1   : > { %v956_v28 = vpop.eup %955  ;;  %v409_v29 = vpop.xlane.xlu2 %408 }
 0x2c2   : > { %v413_v31 = vadd.f32 %v409_v29, %v405_v26  ;;  %622 = vperm.xlu1 %934, %v956_v28   ;;  %v958_v35 = vpop.eup %957 }
 0x2c3   : > { %v562_v32 = vpop.permute.xlu0 %561 }
 0x2c4   : > { %416 = vst.msk [vmem:[#allocation3] sm:$0xff] %vm318_vm1, %v413_v31  ;;  %v569_v33 = vmul.f32 %v562_v32, %v557_v30 }
 0x2c6   : > { %v600_v34 = vadd.f32 %v594_v2, %v569_v33 }
 0x2c8   : > { %602 = vst.msk [vmem:[#allocation4 + $0x10] sm:$0xff] %vm327_vm0, %v600_v34 }
 0x2ca   : > { %v455_v37 = vpop.f32.mrf.mxu1  ;;  %642 = vperm.xlu1 %934, %v958_v35  }
 0x2cb   : > { %v423_v38 = vpop.permute.xlu0 %422  ;;  %v611_v39 = vld [vmem:[#allocation3] sm:$0xff] }
 0x2cc   : > { %v430_v40 = vmul.f32 %v423_v38, %v418_v36  ;;  %959 = vrcp.f32 %v611_v39 }
 0x2ce   : > { %v461_v43 = vadd.f32 %v455_v37, %v430_v40 }
 0x2cf   : > { %v634_v54 = vld [vmem:[#allocation4 + $0x10] sm:$0xff] }
 0x2d0   : > { %463 = vst.msk [vmem:[#allocation4] sm:$0xff] %vm327_vm0, %v461_v43 }
 0x2d2   : > { %v960_v47 = vpop.eup %959  ;;  %v458_v48 = vpop.f32.mrf.mxu1  ;;  %653 = vrot.lane.b32.xlu1 %v651_v45, %s1144_s24 }
 0x2d3   : > { %v462_v49 = vadd.f32 %v458_v48, %v431_v46  ;;  %617 = vperm.xlu2 %935, %v960_v47  }
 0x2d5   : > { %464 = vst.msk [vmem:[#allocation4 + $0x8] sm:$0xff] %vm327_vm0, %v462_v49 }
 0x2d7   : > { %v609_v59 = vld [vmem:[#allocation4] sm:$0xff] }
 0x2dc   : > { %v610_v50 = vld [vmem:[#allocation4 + $0x8] sm:$0xff] }
 0x32d   : > { %v618_v58 = vpop.permute.xlu2 %617 }
 0x32e   : > { %v625_v60 = vmul.f32 %v618_v58, %v609_v59 }
 0x334   : > { %v623_v51 = vpop.permute.xlu1 %622 }
 0x335   : > { %v626_v52 = vmul.f32 %v623_v51, %v610_v50 }
 0x337   : > { %628 = vrot.lane.b32.xlu1 %v626_v52, %s1144_s24 }
 0x33c   : > { %v643_v53 = vpop.permute.xlu1 %642 }
 0x33d   : > { %v650_v55 = vmul.f32 %v643_v53, %v634_v54 }
 0x344   : > { %v654_v56 = vpop.permute.xlu1 %653 }
 0x345   : > { %v656_v57 = vsel %vm327_vm0, %v650_v55, %v654_v56 }
 0x346   : > { %658 = vrot.lane.b32.xlu0 %v656_v57, %s1145_s29 }
 0x3a9   : > { %v629_v61 = vpop.permute.xlu1 %628 }
 0x3aa   : > { %v631_v62 = vsel %vm327_vm0, %v625_v60, %v629_v61 }
 0x3ab   : > { %633 = vst.msk [vmem:[%s310_s6] sm:$0xff] %vm632_vm2, %v631_v62 }
 0x3b8   : > { %v659_v63 = vpop.permute.xlu0 %658 }
 0x3b9   : > { %662 = vst.msk [vmem:[%s310_s6] sm:$0xff] %vm661_vm3, %v659_v63 }
 0x3ba   : > { %1078 = shalt.err (!%p1075_p13)
}
 0x3bb   : > { %861 = dma.vmem_to_hbm [thread:$0]  (%p1221_p9), %s678_s30, 128, %s680_s21, %s664_s7  }
 0x3bc PF: > { %s691_s14 = sand.u32 1, %s1117_s12   ;;  %p874_p0 = pnand %p819_p12, %p1228_p11 }
 0x3bd   : > { %s692_s26 = scalar_lea.sflag [#allocation7], %s691_s14 }
 0x3be   : > { %p875_p1 = pneg %p874_p0 }
 0x3c0   : > { %1112 = dma.done.wait (%p875_p1), %s692_s26, 128  }
 0x3c1   : > { %1114 = vsyncadd (%p875_p1), %s692_s26, 4294967168  ;;  %s22_s17 = sadd.s32 1, %s1137_s17   ;;  %s1396_s28 = sld [smem:[#allocation15_spill]] }
 0x3c2   : > { %p19_p2 = scmp.ge.s32.totalorder %s22_s17, 4   ;;  %s1397_s14 = sld [smem:[#allocation17_spill]] }
 0x3c3   : > { %s1398_s25 = sld [smem:[#allocation16_spill]]  ;;  %s1399_s12 = smov %s1121_s13 }
 0x3c4   : > { %s1401_s15 = smov %s1133_s16 }
 0x3c5   :  { %21 = sbr.rel (!%p19_p2) target bundleno = 10 (0xa), region = 115 }
 0x3c7   : > { %s1400_s13 = smov %s1396_s28 }
 0x3c9   : > { %s1402_s16 = smov %s1398_s25 }
 0x3ca   :  { %698 = vsyncpa [#allocation6], 1 }
 0x3cb   :  { %700 = vsyncpa [#allocation6 + $0x1], 1 }
 0x3cc   :  { %701 = vsyncpa [#allocation9], 1 }
 0x3cd   :  { %703 = vsyncpa [#allocation9 + $0x1], 1 }
 0x3ce   :  { %704 = vsyncpa [#allocation7], 1 }
 0x3cf   :  { %706 = vsyncpa [#allocation7 + $0x1], 1 }

</bundles_post_ra>
